<compile_context>
chip_gen: v6e
topology: v6e:2x2x1
jax: 0.10.0
libtpu: 0.0.40
codegen_flags: <defaults>
</compile_context>

<pallas_src>
import math

import jax
import jax.numpy as jnp
from jax import lax
from jax.experimental import pallas as pl
from jax.experimental.pallas import tpu as pltpu


def _round_up(x: int, m: int) -> int:
    return ((x + m - 1) // m) * m


# ---------------------------------------------------------------------------
# Pass 1: fused Q/K/V projection (runs once per token).
# ---------------------------------------------------------------------------
def make_qkv_projection_kernel(scale: float):
    def kernel(x_ref, wq_ref, bq_ref, wk_ref, wv_ref, q_ref, k_ref, v_ref):
        x = x_ref[0]                                                   # (ts, E) bf16
        q = jnp.dot(x, wq_ref[...], preferred_element_type=jnp.float32)
        # Q bias and the 1/sqrt(d_k) score scale are folded here once per token.
        # K bias is dropped (softmax shift-invariance); V bias is folded into the
        # fc bias on the host (softmax rows sum to 1).
        q_ref[0] = ((q + bq_ref[...]) * scale).astype(q_ref.dtype)
        k_ref[0] = jnp.dot(x, wk_ref[...],
                           preferred_element_type=jnp.float32).astype(k_ref.dtype)
        v_ref[0] = jnp.dot(x, wv_ref[...],
                           preferred_element_type=jnp.float32).astype(v_ref.dtype)
    return kernel


# ---------------------------------------------------------------------------
# Pass 2: flash attention (online softmax) + fc projection.
# ---------------------------------------------------------------------------
def make_flash_kernel(num_heads: int, emb_dim: int, out_dim: int,
                      seq_len: int, padded_seq_len: int, kv_tile: int):
    needs_mask = padded_seq_len != seq_len   # static: only pay for masking if padded

    def kernel(q_ref, k_ref, v_ref, wfc_ref, bfc_ref, o_ref, m_scr, l_scr, acc_scr):
        ki = pl.program_id(2)
        nk = pl.num_programs(2)

        # ---- init: once per (batch, q-tile) ---------------------------------
        @pl.when(ki == 0)
        def _init():
            m_scr[...] = jnp.full(m_scr.shape, -jnp.inf, jnp.float32)
            l_scr[...] = jnp.zeros(l_scr.shape, jnp.float32)
            acc_scr[...] = jnp.zeros(acc_scr.shape, jnp.float32)

        q = q_ref[0]                                  # (tq, H*E) bf16, bias+scale folded
        k = k_ref[0]                                  # (tk, H*E) bf16
        v = v_ref[0]                                  # (tk, H*E) bf16

        if needs_mask:
            col = ki * kv_tile + lax.broadcasted_iota(jnp.int32, (1, kv_tile), 1)
            col_valid = col < seq_len                 # mask padded key columns

        # ---- per kv-tile online-softmax update (static head unroll) ---------
        for h in range(num_heads):
            lo = h * emb_dim
            qh = q[:, lo:lo + emb_dim]
            kh = k[:, lo:lo + emb_dim]
            vh = v[:, lo:lo + emb_dim]
            # scores = q @ k.T (scale already folded into q); bf16 MXU, f32 accumulate.
            s = lax.dot_general(qh, kh, (((1,), (1,)), ((), ())),
                                preferred_element_type=jnp.float32)    # (tq, tk)
            if needs_mask:
                s = jnp.where(col_valid, s, -jnp.inf)
            m_prev = m_scr[h]                                           # (tq, 1)
            m_new = jnp.maximum(m_prev, jnp.max(s, axis=-1, keepdims=True))
            alpha = jnp.exp(m_prev - m_new)
            p = jnp.exp(s - m_new)                                      # (tq, tk) f32
            l_scr[h] = alpha * l_scr[h] + jnp.sum(p, axis=-1, keepdims=True)
            acc_scr[h] = alpha * acc_scr[h] + jnp.dot(
                p.astype(jnp.bfloat16), vh, preferred_element_type=jnp.float32)
            m_scr[h] = m_new

        # ---- finalize: normalize + fold fc per head (no concatenate) --------
        @pl.when(ki == nk - 1)
        def _finalize():
            tq = acc_scr.shape[1]
            wfc = wfc_ref[...]                                          # (H*E, out) bf16
            out = jnp.zeros((tq, out_dim), jnp.float32)
            for h in range(num_heads):
                # Softmax denominator via EUP reciprocal (off the VALU slots).
                inv_l = pl.reciprocal(l_scr[h], approx=True)            # (tq, 1)
                head = (acc_scr[h] * inv_l).astype(jnp.bfloat16)        # (tq, E)
                out = out + jnp.dot(head, wfc[h * emb_dim:(h + 1) * emb_dim, :],
                                    preferred_element_type=jnp.float32)
            o_ref[0] = (out + bfc_ref[...]).astype(o_ref.dtype)
            # Dropout on scores / fc output is identity in eval mode.

    return kernel


# ---------------------------------------------------------------------------
# Wrapper
# ---------------------------------------------------------------------------
def _choose_seq_tile(S: int, target: int):
    """Sequence tile (multiple of 8, ideally 128-multiple) and padded seq length."""
    if S <= target:
        tile = _round_up(S, 8)
        return tile, tile
    tile = max(128, (target // 128) * 128)
    return tile, _round_up(S, tile)


def _vmem_estimate(tile: int, E: int, HE: int, E_out: int, H: int) -> int:
    """Rough per-kernel resident VMEM (double-buffered blocks + scratch + temps)."""
    bf2, f4 = 2, 4
    proj = (2 * bf2 * (tile * E + 3 * E * HE) + 2 * f4 * HE       # inputs + weights
            + 2 * bf2 * 3 * tile * HE                              # bf16 outputs
            + 3 * f4 * tile * HE)                                  # f32 matmul temps
    flash = (2 * bf2 * 3 * tile * HE                               # q/k/v tiles
             + 2 * bf2 * HE * E_out + 2 * f4 * E_out               # wfc, bfc (const)
             + 2 * f4 * tile * E_out                               # f32 output
             + f4 * (H * tile * E + 2 * H * tile * 128)            # acc + padded m/l
             + 3 * f4 * tile * tile)                               # s/p compiler temps
    return max(proj, flash)


def attention_forward(x, params, num_heads, *, seq_tile_target=256,
                      vmem_limit_bytes=48 * 1024 * 1024):
    """x: (B, S, E) float32. params: pre-transposed (in, out) weights, (1, out) biases."""
    B, S, E = x.shape
    HE = num_heads * E
    E_out = params["wfc"].shape[1]
    scale = 1.0 / math.sqrt(E)   # per-head k dim == emb_dim in this module

    # Pick tiles; shrink (down to 128) if the VMEM budget is exceeded.
    # NOTE: on v6e/v5e (128 MiB VMEM) seq_tile_target=512 with a ~96 MiB limit is
    # recommended; defaults here stay inside v7x's 64 MiB/TC.
    tile, Sp = _choose_seq_tile(S, seq_tile_target)
    while tile > 128 and _vmem_estimate(tile, E, HE, E_out, num_heads) > vmem_limit_bytes:
        tile, Sp = _choose_seq_tile(S, tile // 2)
    if _vmem_estimate(tile, E, HE, E_out, num_heads) > vmem_limit_bytes:
        raise ValueError("VMEM budget exceeded even at 128-wide tiles; reduce "
                         "emb_dim/num_heads or split the fc projection into its own pass.")
    ns = Sp // tile

    x_bf = x.astype(jnp.bfloat16)
    if Sp != S:
        x_bf = jnp.pad(x_bf, ((0, 0), (0, Sp - S), (0, 0)))

    wq, wk, wv, wfc = (params[n].astype(jnp.bfloat16) for n in ("wq", "wk", "wv", "wfc"))
    bq = params["bq"].astype(jnp.float32)
    # sum_j softmax_ij = 1  =>  V bias contributes exactly bv @ wfc: fold into fc bias.
    bfc_eff = (params["bfc"] + jnp.dot(params["bv"], params["wfc"])).astype(jnp.float32)

    def const_spec(shape):
        # Weight/bias blocks: full array, constant block index (resident for the call).
        # TODO(synk): single-buffer via pipeline_mode=pl.Buffered(1) and K-tile the
        # weights along H*E for GPT-scale emb_dim under a strict v7x 64 MiB budget.
        return pl.BlockSpec(shape, lambda *_: (0,) * len(shape))

    # ---- pass 1: Q/K/V projection (done once; never recomputed per q-tile) ------
    proj_spec = pltpu.PrefetchScalarGridSpec(
        num_scalar_prefetch=0,
        grid=(B, ns),
        in_specs=[
            pl.BlockSpec((1, tile, E), lambda b, i: (b, i, 0)),   # x tile
            const_spec((E, HE)), const_spec((1, HE)),             # wq, bq
            const_spec((E, HE)),                                  # wk (bk dropped)
            const_spec((E, HE)),                                  # wv (bv folded into bfc)
        ],
        out_specs=[pl.BlockSpec((1, tile, HE), lambda b, i: (b, i, 0))] * 3,
    )
    q, k, v = pl.pallas_call(
        make_qkv_projection_kernel(scale),
        out_shape=[jax.ShapeDtypeStruct((B, Sp, HE), jnp.bfloat16)] * 3,
        grid_spec=proj_spec,
        compiler_params=pltpu.CompilerParams(
            dimension_semantics=("parallel", "parallel"),
            vmem_limit_bytes=vmem_limit_bytes),
    )(x_bf, wq, bq, wk, wv)

    # ---- pass 2: flash attention + fc --------------------------------------------
    flash_spec = pltpu.PrefetchScalarGridSpec(
        num_scalar_prefetch=0,
        grid=(B, ns, ns),
        in_specs=[
            pl.BlockSpec((1, tile, HE), lambda b, qi, ki: (b, qi, 0)),   # Q tile
            pl.BlockSpec((1, tile, HE), lambda b, qi, ki: (b, ki, 0)),   # K tile
            pl.BlockSpec((1, tile, HE), lambda b, qi, ki: (b, ki, 0)),   # V tile
            const_spec((HE, E_out)), const_spec((1, E_out)),             # wfc, bfc_eff
        ],
        out_specs=pl.BlockSpec((1, tile, E_out), lambda b, qi, ki: (b, qi, 0)),
        scratch_shapes=[
            pltpu.VMEM((num_heads, tile, 1), jnp.float32),   # running max m
            pltpu.VMEM((num_heads, tile, 1), jnp.float32),   # running sum l
            pltpu.VMEM((num_heads, tile, E), jnp.float32),   # per-head p@v accumulator
        ],
    )
    out = pl.pallas_call(
        make_flash_kernel(num_heads, E, E_out, S, Sp, tile),
        out_shape=jax.ShapeDtypeStruct((B, Sp, E_out), jnp.float32),
        grid_spec=flash_spec,
        compiler_params=pltpu.CompilerParams(
            # batch + q-tile axes parallel (megacore / v7x dual-TC); kv axis is the
            # sequential online-softmax reduction.
            dimension_semantics=("parallel", "parallel", "arbitrary"),
            vmem_limit_bytes=vmem_limit_bytes),
    )(q, k, v, wfc, bfc_eff)

    return out[:, :S, :] if Sp != S else out


# ---------------------------------------------------------------------------
# Pure-JAX references
# ---------------------------------------------------------------------------
def reference_forward(x, params, num_heads, *, match_kernel_precision=False):
    """Mirrors the PyTorch forward (eval mode). With match_kernel_precision=True it
    applies the kernel's bf16 cast points and bias folds (mathematically identical),
    isolating kernel mechanics from bf16 rounding."""
    B, S, E = x.shape
    f32 = jnp.float32
    scale = 1.0 / math.sqrt(E)

    def split(t):  # (B, S, H*E) -> (B, H, S, E)
        return t.reshape(B, S, num_heads, E).transpose(0, 2, 1, 3)

    if not match_kernel_precision:
        q = jnp.dot(x, params["wq"]) + params["bq"]
        k = jnp.dot(x, params["wk"]) + params["bk"]
        v = jnp.dot(x, params["wv"]) + params["bv"]
        q, k, v = split(q), split(k), split(v)
        s = jnp.einsum("bhqe,bhke->bhqk", q, k) * scale
        p = jax.nn.softmax(s, axis=-1)
        o = jnp.einsum("bhqk,bhke->bhqe", p, v)
        o = o.transpose(0, 2, 1, 3).reshape(B, S, num_heads * E)
        return jnp.dot(o, params["wfc"]) + params["bfc"]

    bf16 = jnp.bfloat16
    xb = x.astype(bf16)
    q = (jnp.dot(xb, params["wq"].astype(bf16), preferred_element_type=f32)
         + params["bq"]) * scale
    k = jnp.dot(xb, params["wk"].astype(bf16), preferred_element_type=f32)
    v = jnp.dot(xb, params["wv"].astype(bf16), preferred_element_type=f32)
    q, k, v = (split(t.astype(bf16)) for t in (q, k, v))
    s = jnp.einsum("bhqe,bhke->bhqk", q, k, preferred_element_type=f32)
    p = jax.nn.softmax(s, axis=-1)
    o = jnp.einsum("bhqk,bhke->bhqe", p.astype(bf16), v, preferred_element_type=f32)
    o = o.astype(bf16).transpose(0, 2, 1, 3).reshape(B, S, num_heads * E)
    out = jnp.dot(o, params["wfc"].astype(bf16), preferred_element_type=f32)
    return out + params["bfc"] + jnp.dot(params["bv"], params["wfc"])


def init_params(key, emb_dim, num_heads):
    """Deterministic Linear-style init (uniform +/- 1/sqrt(fan_in)), pre-transposed."""
    HE = emb_dim * num_heads
    keys = jax.random.split(key, 8)

    def lin(kw, kb, fan_in, fan_out):
        bound = 1.0 / math.sqrt(fan_in)
        w = jax.random.uniform(kw, (fan_in, fan_out), jnp.float32, -bound, bound)
        b = jax.random.uniform(kb, (1, fan_out), jnp.float32, -bound, bound)
        return w, b

    wq, bq = lin(keys[0], keys[1], emb_dim, HE)
    wk, bk = lin(keys[2], keys[3], emb_dim, HE)
    wv, bv = lin(keys[4], keys[5], emb_dim, HE)
    wfc, bfc = lin(keys[6], keys[7], HE, emb_dim)
    return dict(wq=wq, bq=bq, wk=wk, bk=bk, wv=wv, bv=bv, wfc=wfc, bfc=bfc)


if __name__ == "__main__":
    configs = [
        # Primary tiny config. num_heads=1 keeps fc=Linear(E,E) shape-consistent with
        # the PyTorch module. Single tile, unmasked path.
        dict(B=2, S=8, E=32, H=1, tile=256),
        # Multi-tile flash path with padding/masking: S=192 -> padded 256, 2x2 tiles,
        # 2 heads (generalized fc input of H*E; see faithfulness notes).
        dict(B=1, S=192, E=128, H=2, tile=128),
    ]

    key = jax.random.PRNGKey(0)
    for cfg in configs:
        B, S, E, H = cfg["B"], cfg["S"], cfg["E"], cfg["H"]
        key, kx, kp = jax.random.split(key, 3)
        x = jax.random.normal(kx, (B, S, E), dtype=jnp.float32)
        params = init_params(kp, E, H)

        out = jax.block_until_ready(
            attention_forward(x, params, H, seq_tile_target=cfg["tile"]))
        assert out.shape == (B, S, E), (out.shape, cfg)

        ref_match = reference_forward(x, params, H, match_kernel_precision=True)
        ref_f32 = reference_forward(x, params, H, match_kernel_precision=False)
        err_match = float(jnp.max(jnp.abs(out - ref_match)))
        err_f32 = float(jnp.max(jnp.abs(out - ref_f32)))
        assert err_match < 5e-2, f"{cfg}: mismatch vs bf16-matched ref: {err_match}"
        assert err_f32 < 2.5e-1, f"{cfg}: mismatch vs f32 ref: {err_f32}"

    print("KERNEL_OK")
</pallas_src>

<mosaic_0001>
module attributes {stable_mosaic.version = 11 : i64} {
  func.func @kernel(%arg0: i32, %arg1: i32, %arg2: memref<1x8x32xbf16, #tpu.memory_space<vmem>>, %arg3: memref<32x32xbf16, #tpu.memory_space<vmem>>, %arg4: memref<1x32xf32, #tpu.memory_space<vmem>>, %arg5: memref<32x32xbf16, #tpu.memory_space<vmem>>, %arg6: memref<32x32xbf16, #tpu.memory_space<vmem>>, %arg7: memref<1x8x32xbf16, #tpu.memory_space<vmem>>, %arg8: memref<1x8x32xbf16, #tpu.memory_space<vmem>>, %arg9: memref<1x8x32xbf16, #tpu.memory_space<vmem>>) attributes {dimension_semantics = [#tpu.dimension_semantics<parallel>, #tpu.dimension_semantics<parallel>], iteration_bounds = array<i64: 2, 1>, scalar_prefetch = 0 : i64, scratch_operands = 0 : i64, tpu.core_type = #tpu.core_type<tc>, window_params = [{transform_indices = @transform_0, window_bounds = array<i64: 1, 8, 32>}, {pipeline_mode = #tpu.pipeline_mode<synchronous>, transform_indices = @transform_1, window_bounds = array<i64: 32, 32>}, {pipeline_mode = #tpu.pipeline_mode<synchronous>, transform_indices = @transform_2, window_bounds = array<i64: 1, 32>}, {pipeline_mode = #tpu.pipeline_mode<synchronous>, transform_indices = @transform_3, window_bounds = array<i64: 32, 32>}, {pipeline_mode = #tpu.pipeline_mode<synchronous>, transform_indices = @transform_4, window_bounds = array<i64: 32, 32>}, {transform_indices = @transform_5, window_bounds = array<i64: 1, 8, 32>}, {transform_indices = @transform_6, window_bounds = array<i64: 1, 8, 32>}, {transform_indices = @transform_7, window_bounds = array<i64: 1, 8, 32>}]} {
    %c0 = arith.constant 0 : index
    %c0_0 = arith.constant 0 : index
    %c0_1 = arith.constant 0 : index
    %0 = vector.load %arg2[%c0, %c0_0, %c0_1] : memref<1x8x32xbf16, #tpu.memory_space<vmem>>, vector<1x8x32xbf16>
    %1 = vector.shape_cast %0 : vector<1x8x32xbf16> to vector<8x32xbf16>
    %c0_2 = arith.constant 0 : index
    %c0_3 = arith.constant 0 : index
    %2 = vector.load %arg3[%c0_2, %c0_3] : memref<32x32xbf16, #tpu.memory_space<vmem>>, vector<32x32xbf16>
    %cst = arith.constant dense<0.000000e+00> : vector<8x32xf32>
    %3 = tpu.matmul %1, %2, %cst {dimension_numbers = #tpu.dot_dimension_numbers<[1], [0], [0], [1], [0, 0, 1, 1], [], []>} : vector<8x32xbf16>, vector<32x32xbf16>, vector<8x32xf32> -> vector<8x32xf32>
    %c0_4 = arith.constant 0 : index
    %c0_5 = arith.constant 0 : index
    %4 = vector.load %arg4[%c0_4, %c0_5] : memref<1x32xf32, #tpu.memory_space<vmem>>, vector<1x32xf32>
    %5 = vector.broadcast %4 : vector<1x32xf32> to vector<8x32xf32>
    %6 = arith.addf %3, %5 : vector<8x32xf32>
    %cst_6 = arith.constant 0.176776692 : f32
    %7 = vector.broadcast %cst_6 : f32 to vector<8x32xf32>
    %8 = arith.mulf %6, %7 : vector<8x32xf32>
    %9 = arith.truncf %8 : vector<8x32xf32> to vector<8x32xbf16>
    %c0_7 = arith.constant 0 : index
    %c0_8 = arith.constant 0 : index
    %c0_9 = arith.constant 0 : index
    %10 = vector.load %arg7[%c0_7, %c0_8, %c0_9] : memref<1x8x32xbf16, #tpu.memory_space<vmem>>, vector<1x8x32xbf16>
    %11 = vector.shape_cast %10 : vector<1x8x32xbf16> to vector<8x32xbf16>
    %12 = vector.shape_cast %9 : vector<8x32xbf16> to vector<1x8x32xbf16>
    tpu.vector_store %arg7[%c0_7, %c0_8, %c0_9], %12 {strides = array<i32>} : memref<1x8x32xbf16, #tpu.memory_space<vmem>>, vector<1x8x32xbf16>,
    %c0_10 = arith.constant 0 : index
    %c0_11 = arith.constant 0 : index
    %13 = vector.load %arg5[%c0_10, %c0_11] : memref<32x32xbf16, #tpu.memory_space<vmem>>, vector<32x32xbf16>
    %cst_12 = arith.constant dense<0.000000e+00> : vector<8x32xf32>
    %14 = tpu.matmul %1, %13, %cst_12 {dimension_numbers = #tpu.dot_dimension_numbers<[1], [0], [0], [1], [0, 0, 1, 1], [], []>} : vector<8x32xbf16>, vector<32x32xbf16>, vector<8x32xf32> -> vector<8x32xf32>
    %15 = arith.truncf %14 : vector<8x32xf32> to vector<8x32xbf16>
    %c0_13 = arith.constant 0 : index
    %c0_14 = arith.constant 0 : index
    %c0_15 = arith.constant 0 : index
    %16 = vector.load %arg8[%c0_13, %c0_14, %c0_15] : memref<1x8x32xbf16, #tpu.memory_space<vmem>>, vector<1x8x32xbf16>
    %17 = vector.shape_cast %16 : vector<1x8x32xbf16> to vector<8x32xbf16>
    %18 = vector.shape_cast %15 : vector<8x32xbf16> to vector<1x8x32xbf16>
    tpu.vector_store %arg8[%c0_13, %c0_14, %c0_15], %18 {strides = array<i32>} : memref<1x8x32xbf16, #tpu.memory_space<vmem>>, vector<1x8x32xbf16>,
    %c0_16 = arith.constant 0 : index
    %c0_17 = arith.constant 0 : index
    %19 = vector.load %arg6[%c0_16, %c0_17] : memref<32x32xbf16, #tpu.memory_space<vmem>>, vector<32x32xbf16>
    %cst_18 = arith.constant dense<0.000000e+00> : vector<8x32xf32>
    %20 = tpu.matmul %1, %19, %cst_18 {dimension_numbers = #tpu.dot_dimension_numbers<[1], [0], [0], [1], [0, 0, 1, 1], [], []>} : vector<8x32xbf16>, vector<32x32xbf16>, vector<8x32xf32> -> vector<8x32xf32>
    %21 = arith.truncf %20 : vector<8x32xf32> to vector<8x32xbf16>
    %c0_19 = arith.constant 0 : index
    %c0_20 = arith.constant 0 : index
    %c0_21 = arith.constant 0 : index
    %22 = vector.load %arg9[%c0_19, %c0_20, %c0_21] : memref<1x8x32xbf16, #tpu.memory_space<vmem>>, vector<1x8x32xbf16>
    %23 = vector.shape_cast %22 : vector<1x8x32xbf16> to vector<8x32xbf16>
    %24 = vector.shape_cast %21 : vector<8x32xbf16> to vector<1x8x32xbf16>
    tpu.vector_store %arg9[%c0_19, %c0_20, %c0_21], %24 {strides = array<i32>} : memref<1x8x32xbf16, #tpu.memory_space<vmem>>, vector<1x8x32xbf16>,
    return
  }
  func.func @transform_0(%arg0: i32, %arg1: i32) -> (i32, i32, i32) {
    %c0_i32 = arith.constant 0 : i32
    %c0_i32_0 = arith.constant 0 : i32
    return %arg0, %arg1, %c0_i32 : i32, i32, i32
  }
  func.func @transform_1(%arg0: i32, %arg1: i32) -> (i32, i32) {
    %c0_i32 = arith.constant 0 : i32
    %c0_i32_0 = arith.constant 0 : i32
    %c0_i32_1 = arith.constant 0 : i32
    return %c0_i32, %c0_i32_0 : i32, i32
  }
  func.func @transform_2(%arg0: i32, %arg1: i32) -> (i32, i32) {
    %c0_i32 = arith.constant 0 : i32
    %c0_i32_0 = arith.constant 0 : i32
    %c0_i32_1 = arith.constant 0 : i32
    return %c0_i32, %c0_i32_0 : i32, i32
  }
  func.func @transform_3(%arg0: i32, %arg1: i32) -> (i32, i32) {
    %c0_i32 = arith.constant 0 : i32
    %c0_i32_0 = arith.constant 0 : i32
    %c0_i32_1 = arith.constant 0 : i32
    return %c0_i32, %c0_i32_0 : i32, i32
  }
  func.func @transform_4(%arg0: i32, %arg1: i32) -> (i32, i32) {
    %c0_i32 = arith.constant 0 : i32
    %c0_i32_0 = arith.constant 0 : i32
    %c0_i32_1 = arith.constant 0 : i32
    return %c0_i32, %c0_i32_0 : i32, i32
  }
  func.func @transform_5(%arg0: i32, %arg1: i32) -> (i32, i32, i32) {
    %c0_i32 = arith.constant 0 : i32
    %c0_i32_0 = arith.constant 0 : i32
    return %arg0, %arg1, %c0_i32 : i32, i32, i32
  }
  func.func @transform_6(%arg0: i32, %arg1: i32) -> (i32, i32, i32) {
    %c0_i32 = arith.constant 0 : i32
    %c0_i32_0 = arith.constant 0 : i32
    return %arg0, %arg1, %c0_i32 : i32, i32, i32
  }
  func.func @transform_7(%arg0: i32, %arg1: i32) -> (i32, i32, i32) {
    %c0_i32 = arith.constant 0 : i32
    %c0_i32_0 = arith.constant 0 : i32
    return %arg0, %arg1, %c0_i32 : i32, i32, i32
  }
}

</mosaic_0001>

<bundles_post_ra>
// kernel: tpu_custom_call.1
= control target key start
LH: loop header
LB: loop body
LE: loop exit
PB: predicated region body
PF: predicated region fallthrough
CT: control target
= control target key end

     0   :  { %s1557_s0 = inlined_call_operand.hbm [shape: bf16[2,8,32], index: 0, kind: input, shape index: {}]   ;;  %s1558_s1 = inlined_call_operand.hbm [shape: bf16[32,32], index: 1, kind: input, shape index: {}]   ;;  %s1559_s2 = inlined_call_operand.vmem [shape: f32[1,32], index: 2, kind: input, shape index: {}]   ;;  %s1560_s3 = inlined_call_operand.hbm [shape: bf16[32,32], index: 3, kind: input, shape index: {}]   ;;  %s1561_s4 = inlined_call_operand.hbm [shape: bf16[32,32], index: 4, kind: input, shape index: {}]   ;;  %s1562_s5 = inlined_call_operand.hbm [shape: bf16[2,8,32], index: 5, kind: output, shape index: {0}]   ;;  %s1563_s6 = inlined_call_operand.hbm [shape: bf16[2,8,32], index: 6, kind: output, shape index: {1}]   ;;  %s1564_s7 = inlined_call_operand.hbm [shape: bf16[2,8,32], index: 7, kind: output, shape index: {2}]  }
   0x1   :  { %1569 = sst [smem:[#allocation19_spill]] %s1558_s1 }
   0x2   :  { %1570 = sst [smem:[#allocation20_spill]] %s1560_s3 }
   0x3   :  { %1571 = sst [smem:[#allocation21_spill]] %s1561_s4 }
   0x4   :  { %13 = vsyncpa [#allocation3], 0 }
   0x5   :  { %15 = vsyncpa [#allocation3 + $0x1], 0 }
   0x6   :  { %16 = vsyncpa [#allocation6], 0 }
   0x7   :  { %17 = vsyncpa [#allocation9], 0 }
   0x8   :  { %18 = vsyncpa [#allocation4], 0 }
   0x9   :  { %20 = vsyncpa [#allocation4 + $0x1], 0 }
   0xa   :  { %21 = vsyncpa [#allocation12], 0 }
   0xb   :  { %23 = vsyncpa [#allocation12 + $0x1], 0  ;;  %s1275_s24 = smov 0   ;;  %s1277_s25 = smov 0  }
   0xc   :  { %s1279_s26 = smov 0   ;;  %s1281_s27 = smov 0  }
   0xd   :  { %s1283_s28 = smov 0   ;;  %s1285_s29 = smov 0  }
   0xe LB: > { %s1306_s30 = sadd.s32 4294967295, %s1222_s29   ;;  %s1567_s8 = sadd.s32 4294967294, %s1222_s29   ;;  %s1222_s29 = sphi %s1285_s29, %s29_s29   ;;  %s1218_s28 = sphi %s1283_s28, %s1595_s28   ;;  %s1214_s27 = sphi %s1281_s27, %s1594_s27   ;;  %s1210_s26 = sphi %s1279_s26, %s1593_s26   ;;  %s1206_s25 = sphi %s1277_s25, %s1592_s25   ;;  %s1202_s24 = sphi %s1275_s24, %s1591_s24  }
   0xf   : > { %p63_p0 = scmp.ne.s32.totalorder %s1206_s25, %s1202_s24  ;;  %p1565_p1 = scmp.eq.s32.totalorder %s1306_s30, 0 }
  0x10   : > { %p179_p3 = scmp.eq.s32.totalorder %s1567_s8, 1  ;;  %p793_p5 = scmp.ge.s32.totalorder %s1222_s29, 1 }
  0x11   : > { %p1317_p4 = por %p1565_p1, %p63_p0  ;;  %p242_p7 = scmp.lt.s32.totalorder %s1222_s29, 3 }
  0x12   : > { %p1322_p6 = por %p179_p3, %p63_p0  ;;  %s1224_s12 = smov [#allocation5]  }
  0x13   : > { %s1572_s9 = scalar_select %p1317_p4, 1, 0 }
  0x14   : > { %s1573_s10 = scalar_select %p1322_p6, 1, 0 }
  0x15   : > { %p1327_p8 = pnand %p793_p5, %p242_p7  ;;  %s254_s13 = sshll.u32 %s1224_s12, 4  ;;  %s255_s13 = int_to_ptr.vmem [resolvable:$true] %s254_s13 }
  0x16   : > { %s1225_s15 = smov [#allocation7]   ;;  %s1226_s17 = smov [#allocation8]  }
  0x17   : > { %p879_p9 = pneg %p1327_p8  ;;  %s270_s16 = sshll.u32 %s1225_s15, 4  ;;  %s271_s16 = int_to_ptr.vmem [resolvable:$true] %s270_s16 }
  0x18   : > { %s283_s18 = sshll.u32 %s1226_s17, 4  ;;  %s983_s19 = scalar_lea.vmem %s255_s13, 256  ;;  %s284_s18 = int_to_ptr.vmem [resolvable:$true] %s283_s18 }
  0x19   : > { %p1336_p11 = pnand %p879_p9, %p1565_p1  ;;  %p984_p13 = scmp.ne.s32.totalorder %s255_s13, %s983_s19 }
  0x1a   : > { %p991_p5 = scmp.lt.s32.totalorder %s255_s13, %s255_s13  ;;  %p992_p7 = scmp.lt.s32.totalorder %s983_s19, %s983_s19 }
  0x1b   : > { %p974_p12 = pneg %p1336_p11 }
  0x1c   : > { %p993_p9 = por %p992_p7, %p991_p5 }
  0x1d   : > { %p986_p0 = pnand %p984_p13, %p974_p12 }
  0x1f   : > { %p987_p3 = pneg %p986_p0 }
  0x21   : > { %p994_p10 = pnand %p993_p9, %p987_p3 }
  0x23   : > { %997 = shalt.err (!%p994_p10)
}
  0x24   : > { %s1227_s20 = smov 64   ;;  %s1228_s21 = smov 4  }
  0x25   : > { %s1576_s1 = sld [smem:[#allocation19_spill]]  ;;  %s1009_s12 = scalar_lea.vmem %s271_s16, 256 }
  0x26   : > { %p1010_p1 = scmp.ne.s32.totalorder %s271_s16, %s1009_s12  ;;  %p1017_p2 = scmp.lt.s32.totalorder %s271_s16, %s271_s16 }
  0x27   : > { %p1018_p6 = scmp.lt.s32.totalorder %s1009_s12, %s1009_s12 }
  0x28   : > { %p1012_p13 = pnand %p1010_p1, %p974_p12 }
  0x29   : > { %p1019_p5 = por %p1018_p6, %p1017_p2 }
  0x2a   : > { %p1013_p0 = pneg %p1012_p13 }
  0x2b   : > { %882 = dma.hbm_to_vmem [thread:$0]  (!%p1336_p11), %s1576_s1, 256, %s255_s13, [#allocation6], %s1227_s20, %s1227_s20, %s1228_s21  }
  0x2c   : > { %p1020_p3 = pnand %p1019_p5, %p1013_p0 }
  0x2e   : > { %1023 = shalt.err (!%p1020_p3)
}
  0x2f   : > { %s1577_s3 = sld [smem:[#allocation20_spill]]  ;;  %s1035_s13 = scalar_lea.vmem %s284_s18, 256 }
  0x30   : > { %p1036_p10 = scmp.ne.s32.totalorder %s284_s18, %s1035_s13  ;;  %p1043_p9 = scmp.lt.s32.totalorder %s284_s18, %s284_s18 }
  0x31   : > { %p1044_p13 = scmp.lt.s32.totalorder %s1035_s13, %s1035_s13 }
  0x32   : > { %p1038_p7 = pnand %p1036_p10, %p974_p12 }
  0x33   : > { %p1045_p4 = por %p1044_p13, %p1043_p9 }
  0x34   : > { %p1039_p1 = pneg %p1038_p7 }
  0x35   : > { %885 = dma.hbm_to_vmem [thread:$0]  (!%p1336_p11), %s1577_s3, 256, %s271_s16, [#allocation6], %s1227_s20, %s1227_s20, %s1228_s21  }
  0x36   : > { %p1046_p2 = pnand %p1045_p4, %p1039_p1 }
  0x38   : > { %1049 = shalt.err (!%p1046_p2)
}
  0x39   : > { %s1578_s4 = sld [smem:[#allocation21_spill]]  ;;  %s50_s16 = sadd.s32 1, %s1210_s26 }
  0x3a   : > { %s41_s23 = sadd.s32 1, %s1218_s28  ;;  %p57_p4 = scmp.ne.s32.totalorder %s1210_s26, %s1206_s25 }
  0x3b   : > { %p43_p6 = scmp.ge.s32.totalorder %s41_s23, 2  ;;  %p58_p12 = scmp.eq.s32.totalorder %s1222_s29, 0 }
  0x3c   : > { %p1579_p0 = scmp.eq.s32.totalorder %s1306_s30, 1  ;;  %p906_p3 = scmp.lt.s32.totalorder %s1222_s29, 2 }
  0x3d   : > { %s1597_s23 = smov (%p43_p6, %s41_s23), 0  ;;  %p59_p10 = por %p58_p12, %p57_p4 }
  0x3e   : > { %p1373_p5 = por %p1579_p0, %p57_p4  ;;  %s297_s12 = sand.u32 1, %s1210_s26  }
  0x3f   : > { %888 = dma.hbm_to_vmem [thread:$0]  (!%p1336_p11), %s1578_s4, 256, %s284_s18, [#allocation9], %s1227_s20, %s1227_s20, %s1228_s21  }
  0x40   : > { %s45_s15 = ssub.s32 %s1218_s28, %s1597_s23  ;;  %s798_s18 = sshll.u32 %s297_s12, 2 }
  0x41   : > { %p48_p7 = scmp.eq.s32.totalorder %s45_s15, 0  ;;  %s799_s20 = sshll.u32 %s1218_s28, 6 }
  0x42   : > { %s307_s19 = scalar_lea.hbm %s1557_s0, %s799_s20  ;;  %s301_s22 = scalar_lea.vmem [#allocation2], %s798_s18 }
  0x43   : > { %s1385_s21 = scalar_select %p48_p7, %s1210_s26, %s50_s16  }
  0x44   : > { %s309_s8 = sshll.u32 %s301_s22, 4  ;;  %p1392_p11 = pnand %p906_p3, %p59_p10  ;;  %s310_s8 = int_to_ptr.vmem [resolvable:$true] %s309_s8 }
  0x45   : > { %s298_s3 = scalar_lea.sflag [#allocation3], %s297_s12  ;;  %s1063_s15 = scalar_lea.vmem %s310_s8, 64 }
  0x46   : > { %p1052_p1 = pneg %p1392_p11  ;;  %p1064_p9 = scmp.ne.s32.totalorder %s310_s8, %s1063_s15 }
  0x47   : > { %s1229_s16 = smov [#allocation2]  }
  0x48   : > { %p1066_p13 = pnand %p1064_p9, %p1052_p1  ;;  %s1068_s4 = sshll.u32 %s1229_s16, 4  ;;  %s1069_s4 = int_to_ptr.vmem [resolvable:$false] %s1068_s4 }
  0x49   : > { %s1070_s20 = scalar_lea.vmem %s1069_s4, 128  ;;  %p1071_p4 = scmp.lt.s32.totalorder %s310_s8, %s1069_s4 }
  0x4a   : > { %p1067_p2 = pneg %p1066_p13  ;;  %p1072_p6 = scmp.lt.s32.totalorder %s1070_s20, %s1063_s15 }
  0x4c   : > { %p1073_p12 = por %p1072_p6, %p1071_p4 }
  0x4e   : > { %p1074_p0 = pnand %p1073_p12, %p1067_p2 }
  0x50   : > { %1077 = shalt.err (!%p1074_p0)
}
  0x51   : > { %892 = dma.hbm_to_vmem [thread:$0]  (!%p1392_p11), %s307_s19, 64, %s310_s8, %s298_s3  }
  0x52   : > { %318 = sbr.rel (%p1327_p8) target bundleno = 364 (0x16c), region = 40  ;;  %s1403_s12 = sand.u32 (!%p1327_p8), 1, %s1206_s25  }
  0x53   : > { %s1406_s18 = sshll.u32 (!%p1327_p8), %s1403_s12, 2  ;;  %s321_s4 = scalar_lea.sflag (!%p1327_p8), [#allocation3], %s1403_s12 }
  0x54   : > { %s324_s17 = scalar_lea.vmem (!%p1327_p8), [#allocation2], %s1406_s18  ;;  %p1582_p3 = scmp.ne.s32.totalorder (!%p1327_p8), %s1572_s9, 0 }
  0x57   : > { %1181 = dma.done.wait (%p1582_p3), %s321_s4, 64  }
  0x58   : > { %1183 = vsyncadd (%p1582_p3), %s321_s4, 4294967232  ;;  %p1583_p10 = scmp.eq.s32.totalorder %s1306_s30, 0 }
  0x5a   : > { %1185 = dma.done.wait (%p1583_p10), [#allocation6], 512   ;;  %p1584_p8 = pmov %p1583_p10 }
  0x5c   : > { %1187 = vsyncadd (%p1584_p8), [#allocation6], 4294966784  ;;  %p1585_p7 = pmov %p1584_p8 }
  0x5e   : > { %1189 = dma.done.wait (%p1585_p7), [#allocation9], 256   ;;  %p1586_p11 = pmov %p1585_p7 }
  0x5f   : > { %v1230_v0 = vmov 0.0   ;;  %vm1231_vm0 = vmmov 0   ;;  %v966_v1 = vld [vmem:[#allocation5 + $0x8] sm:$0xff]   ;;  %v967_v2 = vld [vmem:[#allocation7 + $0x8] sm:$0xff]   ;;  %v968_v3 = vld [vmem:[#allocation5] sm:$0xff]   ;;  %vm402_vm1 = vcmask 261120  }
  0x60   : > { %1191 = vsyncadd (%p1586_p11), [#allocation9], 4294967040  ;;  %835 = vmatprep.subr.bf16.mxu0 %v1230_v0  ;;  %843 = vmatprep.subr.bf16.mxu1 %v1230_v0  ;;  %v969_v4 = vld [vmem:[#allocation7] sm:$0xff]   ;;  %v378_v5 = vld [vmem:[%s324_s17] sm:$0xf]  ;;  %s571_s8 = sand.u32 1, %s1306_s30  }
  0x61   : > { %839 = vmatprep.mubr.msk.bf16.mxu0 %vm1231_vm0, %v1230_v0  ;;  %847 = vmatprep.mubr.msk.bf16.mxu1 %vm1231_vm0, %v1230_v0  ;;  %v970_v6 = vld [vmem:[#allocation8 + $0x8] sm:$0xff]   ;;  %v971_v7 = vld [vmem:[#allocation8] sm:$0xff]   ;;  %v808_v8 = vld [vmem:[%s1559_s2] ss:$0 sm:$0xff]  ;;  %s1430_s9 = sshll.u32 %s1214_s27, 6  ;;  %s369_s11 = scalar_lea.vmem [#allocation11], %s1406_s18 }
  0x62   : > { %836 = vmatpush3.bf16.msra.mxu0 %v966_v1  ;;  %844 = vmatpush3.bf16.msra.mxu1 %v967_v2  ;;  %s605_s13 = sshll.u32 %s369_s11, 4  ;;  %s1568_s19 = scalar_lea.vmem [#allocation10], %s1406_s18  ;;  %vm448_vm2 = vcmask 257024   ;;  %s1442_s13 = int_to_ptr.vmem [resolvable:$true] %s605_s13 }
  0x63   : > { %837 = vmatprep.subr.bf16.mxu0 %v1230_v0  ;;  %845 = vmatprep.subr.bf16.mxu1 %v1230_v0  ;;  %s591_s22 = sshll.u32 %s1568_s19, 4  ;;  %s1440_s20 = scalar_lea.hbm %s1563_s6, %s1430_s9  ;;  %s1451_s22 = int_to_ptr.vmem [resolvable:$true] %s591_s22 }
  0x64   : > { %s1449_s4 = scalar_lea.hbm %s1562_s5, %s1430_s9  ;;  %s1453_s17 = scalar_lea.sflag [#allocation12], %s571_s8 }
  0x65   : > { %s1078_s1 = scalar_lea.vmem %s1442_s13, 64  ;;  %s1232_s3 = smov [#allocation11]  }
  0x66   : > { %838 = vmatpush3.bf16.msra.mxu0 %v968_v3  ;;  %846 = vmatpush3.bf16.msra.mxu1 %v969_v4  ;;  %p1079_p1 = scmp.ne.s32.totalorder %s1442_s13, %s1078_s1  ;;  %s1082_s15 = sshll.u32 %s1232_s3, 4  ;;  %s1083_s15 = int_to_ptr.vmem [resolvable:$false] %s1082_s15 }
  0x67   : > { %851 = vmatprep.subr.bf16.mxu0 %v1230_v0  ;;  %p1085_p2 = scmp.lt.s32.totalorder %s1442_s13, %s1083_s15 }
  0x68   : > { %p1080_p9 = pnand %p1079_p1, %p1373_p5 }
  0x69   : > { %840 = vmatmul.mubr.msk.bf16.vlgmr.msra.gmra.mxu0 %vm402_vm1, %v378_v5  ;;  %848 = vmatmul.mubr.msk.bf16.vlgmr.msra.gmra.mxu1 %vm402_vm1, %v378_v5 }
  0x6a   : > { %852 = vmatpush3.bf16.msra.mxu0 %v970_v6  ;;  %855 = vmatprep.mubr.msk.bf16.mxu0 %vm1231_vm0, %v1230_v0  ;;  %p1081_p13 = pneg %p1080_p9 }
  0x6b   : > { %853 = vmatprep.subr.bf16.mxu0 %v1230_v0 }
  0x6e   : > { %854 = vmatpush3.bf16.msra.mxu0 %v971_v7 }
  0x71   : > { %856 = vmatmul.mubr.msk.bf16.vlgmr.msra.gmra.mxu0 %vm402_vm1, %v378_v5 }
 0x129   : > { %v440_v9 = vpop.f32.mrf.mxu0  ;;  %v500_v11 = vpop.f32.mrf.mxu1 }
 0x12a   : > { %v441_v10 = vadd.f32 %v808_v8, %v440_v9  ;;  %v506_v13 = vpack.c.bf16 %v500_v11, %v500_v11 }
 0x12b   : > { %v841_v12 = vpop.f32.mrf.mxu0  ;;  %v849_v15 = vpop.f32.mrf.mxu1 }
 0x12c   : > { %v446_v14 = vmul.f32 0.17677669, %v441_v10  ;;  %507 = vst.msk [vmem:[%s369_s11] sm:$0xf] %vm448_vm2, %v506_v13  ;;  %s1084_s11 = scalar_lea.vmem %s1083_s15, 128 }
 0x12d   : > { %v443_v16 = vpop.f32.mrf.mxu0  ;;  %v503_v18 = vpop.f32.mrf.mxu1  ;;  %p1086_p4 = scmp.lt.s32.totalorder %s1084_s11, %s1078_s1 }
 0x12e   : > { %v447_v17 = vpack.c.bf16 %v446_v14, %v446_v14 }
 0x12f   : > { %p1087_p6 = por %p1086_p4, %p1085_p2 }
 0x131   : > { %p1088_p12 = pnand %p1087_p6, %p1081_p13 }
 0x133   : > { %1091 = shalt.err (!%p1088_p12)
}
 0x134   : > { %s1092_s8 = scalar_lea.hbm %s1440_s20, 64  ;;  %s1096_s30 = scalar_lea.hbm %s1563_s6, 128 }
 0x135   : > { %p1093_p0 = scmp.ne.s32.totalorder %s1440_s20, %s1092_s8  ;;  %p1097_p8 = scmp.lt.s32.totalorder %s1440_s20, %s1563_s6 }
 0x136   : > { %p1098_p7 = scmp.lt.s32.totalorder %s1096_s30, %s1092_s8 }
 0x137   : > { %p1094_p3 = pnand %p1093_p0, %p1373_p5 }
 0x138   : > { %p1099_p11 = por %p1098_p7, %p1097_p8 }
 0x139   : > { %p1095_p10 = pneg %p1094_p3 }
 0x13b   : > { %p1100_p1 = pnand %p1099_p11, %p1095_p10 }
 0x13d   : > { %1103 = shalt.err (!%p1100_p1)
}
 0x13e   : > { %874 = dma.vmem_to_hbm [thread:$0]  (%p1373_p5), %s1442_s13, 64, %s1440_s20, %s1453_s17   ;;  %v842_v19 = vpop.f32.mrf.mxu0  ;;  %v850_v20 = vpop.f32.mrf.mxu1 }
 0x13f   : > { %s376_s19 = scalar_lea.vmem [#allocation13], %s1406_s18  ;;  %s1587_s15 = scalar_lea.vmem [#allocation10], %s1406_s18 }
 0x140   : > { %s1479_s1 = sshll.u32 %s376_s19, 4  ;;  %449 = vst.msk [vmem:[%s1587_s15] sm:$0xf] %vm448_vm2, %v447_v17  ;;  %v558_v21 = vpop.f32.mrf.mxu0  ;;  %s567_s11 = scalar_lea.sflag [#allocation4], %s1403_s12  ;;  %s620_s1 = int_to_ptr.vmem [resolvable:$true] %s1479_s1 }
 0x141   : > { %s1104_s8 = scalar_lea.vmem %s1451_s22, 64  ;;  %s1233_s16 = smov [#allocation10]  }
 0x142   : > { %p1105_p9 = scmp.ne.s32.totalorder %s1451_s22, %s1104_s8  ;;  %s1108_s27 = sshll.u32 %s1233_s16, 4  ;;  %s1109_s27 = int_to_ptr.vmem [resolvable:$false] %s1108_s27 }
 0x143   : > { %s1110_s13 = scalar_lea.vmem %s1109_s27, 128  ;;  %p1111_p4 = scmp.lt.s32.totalorder %s1451_s22, %s1109_s27 }
 0x144   : > { %p1106_p13 = pnand %p1105_p9, %p1373_p5  ;;  %p1112_p6 = scmp.lt.s32.totalorder %s1110_s13, %s1104_s8 }
 0x146   : > { %p1107_p2 = pneg %p1106_p13  ;;  %p1113_p12 = por %p1112_p6, %p1111_p4 }
 0x148   : > { %p1114_p0 = pnand %p1113_p12, %p1107_p2 }
 0x14a   : > { %1117 = shalt.err (!%p1114_p0)
}
 0x14b   : > { %s1118_s20 = scalar_lea.hbm %s1449_s4, 64  ;;  %s1122_s3 = scalar_lea.hbm %s1562_s5, 128 }
 0x14c   : > { %p1119_p3 = scmp.ne.s32.totalorder %s1449_s4, %s1118_s20  ;;  %p1123_p7 = scmp.lt.s32.totalorder %s1449_s4, %s1562_s5 }
 0x14d   : > { %p1124_p11 = scmp.lt.s32.totalorder %s1122_s3, %s1118_s20 }
 0x14e   : > { %p1120_p10 = pnand %p1119_p3, %p1373_p5 }
 0x14f   : > { %p1125_p1 = por %p1124_p11, %p1123_p7 }
 0x150   : > { %p1121_p8 = pneg %p1120_p10 }
 0x152   : > { %p1126_p9 = pnand %p1125_p1, %p1121_p8 }
 0x154   : > { %1129 = shalt.err (!%p1126_p9)
}
 0x155   : > { %873 = dma.vmem_to_hbm [thread:$0]  (%p1373_p5), %s1451_s22, 64, %s1449_s4, %s567_s11   ;;  %v564_v22 = vpack.c.bf16 %v558_v21, %v558_v21  ;;  %v857_v23 = vpop.f32.mrf.mxu0 }
 0x156   : > { %s1509_s13 = scalar_lea.hbm %s1564_s7, %s1430_s9  ;;  %s1130_s20 = scalar_lea.vmem %s620_s1, 64 }
 0x157   : > { %565 = vst.msk [vmem:[%s376_s19] sm:$0xf] %vm448_vm2, %v564_v22  ;;  %v561_v24 = vpop.f32.mrf.mxu0  ;;  %p1131_p13 = scmp.ne.s32.totalorder %s620_s1, %s1130_s20  ;;  %s1234_s12 = smov [#allocation13]  }
 0x158   : > { %s1134_s30 = sshll.u32 %s1234_s12, 4  ;;  %s1135_s30 = int_to_ptr.vmem [resolvable:$false] %s1134_s30 }
 0x159   : > { %p1132_p2 = pnand %p1131_p13, %p1373_p5  ;;  %s1136_s22 = scalar_lea.vmem %s1135_s30, 128 }
 0x15a   : > { %p1137_p6 = scmp.lt.s32.totalorder %s620_s1, %s1135_s30  ;;  %p1138_p12 = scmp.lt.s32.totalorder %s1136_s22, %s1130_s20 }
 0x15b   : > { %p1133_p4 = pneg %p1132_p2 }
 0x15c   : > { %p1139_p0 = por %p1138_p12, %p1137_p6 }
 0x15e   : > { %p1140_p3 = pnand %p1139_p0, %p1133_p4 }
 0x160   : > { %1143 = shalt.err (!%p1140_p3)
}
 0x161   : > { %s1144_s18 = scalar_lea.hbm %s1509_s13, 64  ;;  %s1148_s19 = scalar_lea.hbm %s1564_s7, 128 }
 0x162   : > { %p1145_p10 = scmp.ne.s32.totalorder %s1509_s13, %s1144_s18  ;;  %p1149_p11 = scmp.lt.s32.totalorder %s1509_s13, %s1564_s7 }
 0x163   : > { %p1150_p1 = scmp.lt.s32.totalorder %s1148_s19, %s1144_s18 }
 0x164   : > { %p1146_p8 = pnand %p1145_p10, %p1373_p5 }
 0x165   : > { %p1151_p9 = por %p1150_p1, %p1149_p11 }
 0x166   : > { %p1147_p7 = pneg %p1146_p8 }
 0x168   : > { %p1152_p13 = pnand %p1151_p9, %p1147_p7 }
 0x16a   : > { %1155 = shalt.err (!%p1152_p13)
}
 0x16b   : > { %875 = dma.vmem_to_hbm [thread:$0]  (%p1373_p5), %s620_s1, 64, %s1509_s13, %s1453_s17   ;;  %v858_v25 = vpop.f32.mrf.mxu0 }
 0x16c PF: > { %s631_s15 = sand.u32 1, %s1202_s24   ;;  %p1588_p2 = scmp.ne.s32.totalorder %s1573_s10, 0 }
 0x16d   : > { %p1589_p4 = scmp.ge.s32.totalorder %s1222_s29, 2  ;;  %s632_s16 = scalar_lea.sflag [#allocation4], %s631_s15 }
 0x16f   : > { %p894_p6 = pnand %p1589_p4, %p1588_p2 }
 0x171   : > { %p895_p12 = pneg %p894_p6 }
 0x173   : > { %1193 = dma.done.wait (%p895_p12), %s632_s16, 64  }
 0x174   : > { %1195 = vsyncadd (%p895_p12), %s632_s16, 4294967232  ;;  %s1590_s8 = sadd.s32 4294967294, %s1222_s29  }
 0x175   : > { %s640_s27 = sand.u32 1, %s1590_s8  }
 0x176   : > { %s641_s14 = scalar_lea.sflag [#allocation12], %s640_s27 }
 0x177   : > { %1197 = dma.done.wait (%p895_p12), %s641_s14, 128  }
 0x178   : > { %1199 = vsyncadd (%p895_p12), %s641_s14, 4294967168  ;;  %s29_s29 = sadd.s32 1, %s1222_s29   ;;  %s1591_s24 = smov %s1206_s25 }
 0x179   : > { %p26_p5 = scmp.ge.s32.totalorder %s29_s29, 4   ;;  %s1592_s25 = smov %s1210_s26 }
 0x17a   : > { %s1593_s26 = smov %s1385_s21  ;;  %s1594_s27 = smov %s1218_s28 }
 0x17b   : > { %s1595_s28 = smov %s1597_s23  ;;  %28 = sbr.rel (!%p26_p5) target bundleno = 14 (0xe), region = 129 }
 0x180   :  { %655 = vsyncpa [#allocation3], 1 }
 0x181   :  { %657 = vsyncpa [#allocation3 + $0x1], 1 }
 0x182   :  { %658 = vsyncpa [#allocation6], 1 }
 0x183   :  { %659 = vsyncpa [#allocation9], 1 }
 0x184   :  { %660 = vsyncpa [#allocation4], 1 }
 0x185   :  { %662 = vsyncpa [#allocation4 + $0x1], 1 }
 0x186   :  { %663 = vsyncpa [#allocation12], 1 }
 0x187   :  { %665 = vsyncpa [#allocation12 + $0x1], 1 }

</bundles_post_ra>
